<compile_context>
chip_gen: v6e
topology: v6e:2x2x1
jax: 0.10.0
libtpu: 0.0.40
codegen_flags: <defaults>
</compile_context>

<pallas_src>
import functools
import math

import jax
import jax.numpy as jnp
from jax import lax
from jax.experimental import pallas as pl
from jax.experimental.pallas import tpu as pltpu


def _mha_kernel(x_ref, wqkv_ref, bqkv_ref, wp_ref, bp_ref, o_ref, qkv_ref,
                *, num_heads, emb_size, seq_len, tq):
    """Grid: (batch, q_tile).

    x_ref    : (1, N, E)   full sequence of this batch (resident across q-tiles)
    wqkv_ref : (E, 3E)     pre-transposed, fused [Wq^T | Wk^T | Wv^T]
    bqkv_ref : (1, 3E)     fused [bq | bk | bv]
    wp_ref   : (E, E)      pre-transposed projection weight (Wp^T)
    bp_ref   : (1, E)
    o_ref    : (1, tq, E)  output q-tile
    qkv_ref  : (N, 3E)     VMEM scratch, persists across the q-tiles of a batch
    """
    E = emb_size
    H = num_heads
    d = E // H
    qi = pl.program_id(1)

    # ---- fused QKV projection: one big MXU matmul, once per batch ----------
    @pl.when(qi == 0)
    def _():
        x = x_ref[0]                                               # (N, E), native dtype
        qkv = jnp.dot(x, wqkv_ref[...], preferred_element_type=jnp.float32)
        qkv = qkv + bqkv_ref[...].astype(jnp.float32)              # (N, 3E), f32 acc
        qkv_ref[...] = qkv.astype(qkv_ref.dtype)

    kv_all = qkv_ref[...]                                          # (N, 3E)
    if tq == seq_len:                                              # static branch
        q_all = kv_all
    else:
        q_start = pl.multiple_of(qi * tq, tq)
        q_all = qkv_ref[pl.ds(q_start, tq), :]                     # (tq, 3E)

    wp_all = wp_ref[...]                                           # (E, E) = Wp^T
    inv_scale = 1.0 / (emb_size ** 0.5)                            # module uses sqrt(E)
    cdt = kv_all.dtype

    # ---- per-head attention; projection folded into the accumulation -------
    acc = jnp.zeros((tq, E), jnp.float32)
    for h in range(H):                                             # small static unroll
        lo = h * d
        qh = q_all[:, lo:lo + d]                                   # (tq, d)
        kh = kv_all[:, E + lo:E + lo + d]                          # (N,  d)
        vh = kv_all[:, 2 * E + lo:2 * E + lo + d]                  # (N,  d)

        # energy = q_h @ k_h^T — transposed RHS consumed natively, no .T
        energy = lax.dot_general(qh, kh, (((1,), (1,)), ((), ())),
                                 preferred_element_type=jnp.float32)   # (tq, N)

        scaled = energy * inv_scale
        m = jnp.max(scaled, axis=-1, keepdims=True)
        p = jnp.exp(scaled - m)
        denom = jnp.sum(p, axis=-1, keepdims=True)
        att = p * pl.reciprocal(denom, approx=True)                # f32 softmax
        # TODO(synk): train-time attention dropout and the optional mask branch
        # are not implemented (eval-mode identity / mask=None path only).

        oh = jnp.dot(att.astype(cdt), vh,
                     preferred_element_type=jnp.float32)           # (tq, d)

        # concat_h(o_h) @ Wp^T  ==  sum_h  o_h @ Wp^T[h*d:(h+1)*d, :]
        acc = acc + jnp.dot(oh.astype(wp_all.dtype), wp_all[lo:lo + d, :],
                            preferred_element_type=jnp.float32)

    out = acc + bp_ref[...].astype(jnp.float32)                    # (tq, E)
    o_ref[0] = out.astype(o_ref.dtype)


def _pick_q_tile(n):
    for cand in (256, 128, 64, 32, 16, 8):
        if n % cand == 0:
            return cand
    return n  # tiny / odd N: a single tile equal to the full sequence


def ts_attention(x, params, *, num_heads):
    """x: (B, N, E). params: PyTorch nn.Linear layout (W: [out, in], b: [1, out])."""
    B, N, E = x.shape
    assert E % num_heads == 0

    dt = x.dtype
    # Host-side weight prep (once, outside the kernel): pre-transpose + fuse.
    wqkv_t = jnp.concatenate(
        [params["wq"].T, params["wk"].T, params["wv"].T], axis=1).astype(dt)   # (E, 3E)
    bqkv = jnp.concatenate(
        [params["bq"], params["bk"], params["bv"]], axis=1).astype(dt)         # (1, 3E)
    wp_t = params["wp"].T.astype(dt)                                           # (E, E)
    bp = params["bp"].astype(dt)                                               # (1, E)

    tq = _pick_q_tile(N)
    n_q_tiles = N // tq

    kernel = functools.partial(_mha_kernel, num_heads=num_heads, emb_size=E,
                               seq_len=N, tq=tq)

    itemsize = dt.itemsize
    # Advisory scheduling hint for XLA.
    cost = pl.CostEstimate(
        flops=int(B * (8 * N * E * E + 4 * N * N * E)),
        transcendentals=int(B * num_heads * N * N),
        bytes_accessed=int((2 * B * N * E + 4 * E * E + 4 * E) * itemsize),
    )

    # VMEM budget: resident weights+biases, double-buffered x/out blocks,
    # persistent QKV scratch, f32 softmax temporaries; clamped for v7x (64 MiB).
    vmem_need = ((3 * E * E + E * E + 4 * E) * itemsize    # weights + biases
                 + 2 * N * E * itemsize                    # x block (double buffer)
                 + N * 3 * E * itemsize                    # QKV scratch
                 + 2 * tq * E * itemsize                   # out block (double buffer)
                 + 4 * tq * N * 4)                         # f32 energy / softmax temps
    vmem_limit = int(min(max(2 * vmem_need, 16 * 1024 * 1024), 64 * 1024 * 1024))

    grid_spec = pltpu.PrefetchScalarGridSpec(
        num_scalar_prefetch=0,
        grid=(B, n_q_tiles),
        in_specs=[
            pl.BlockSpec((1, N, E), lambda b, q: (b, 0, 0)),   # x (full seq, resident)
            pl.BlockSpec((E, 3 * E), lambda b, q: (0, 0)),     # fused Wqkv^T
            pl.BlockSpec((1, 3 * E), lambda b, q: (0, 0)),     # fused bias
            pl.BlockSpec((E, E), lambda b, q: (0, 0)),         # Wp^T
            pl.BlockSpec((1, E), lambda b, q: (0, 0)),         # bp
        ],
        out_specs=pl.BlockSpec((1, tq, E), lambda b, q: (b, q, 0)),
        scratch_shapes=[pltpu.VMEM((N, 3 * E), dt)],
    )

    return pl.pallas_call(
        kernel,
        out_shape=jax.ShapeDtypeStruct((B, N, E), x.dtype),
        grid_spec=grid_spec,
        compiler_params=pltpu.CompilerParams(
            # batch axis is megacore-parallel; the q-tile axis carries the
            # QKV-scratch dependency so it stays "arbitrary".
            dimension_semantics=("parallel", "arbitrary"),
            vmem_limit_bytes=vmem_limit,
        ),
        cost_estimate=cost,
    )(x, wqkv_t, bqkv, wp_t, bp)


def _init_params(key, emb_size):
    """Deterministic init mimicking nn.Linear default (uniform +/- 1/sqrt(in))."""
    ks = jax.random.split(key, 8)
    bound = 1.0 / math.sqrt(emb_size)

    def u(k, shape):
        return jax.random.uniform(k, shape, jnp.float32, -bound, bound)

    return {
        "wq": u(ks[0], (emb_size, emb_size)), "bq": u(ks[1], (1, emb_size)),
        "wk": u(ks[2], (emb_size, emb_size)), "bk": u(ks[3], (1, emb_size)),
        "wv": u(ks[4], (emb_size, emb_size)), "bv": u(ks[5], (1, emb_size)),
        "wp": u(ks[6], (emb_size, emb_size)), "bp": u(ks[7], (1, emb_size)),
    }


def _reference(x, params, num_heads):
    """Pure-JAX reference mirroring the PyTorch forward (mask=None, eval dropout)."""
    B, N, E = x.shape
    d = E // num_heads

    def lin(x, w, b):
        return jnp.einsum("bne,oe->bno", x, w) + b[0]

    q = lin(x, params["wq"], params["bq"]).reshape(B, N, num_heads, d).transpose(0, 2, 1, 3)
    k = lin(x, params["wk"], params["bk"]).reshape(B, N, num_heads, d).transpose(0, 2, 1, 3)
    v = lin(x, params["wv"], params["bv"]).reshape(B, N, num_heads, d).transpose(0, 2, 1, 3)

    energy = jnp.einsum("bhqd,bhkd->bhqk", q, k)
    att = jax.nn.softmax(energy / (E ** 0.5), axis=-1)
    out = jnp.einsum("bhal,bhlv->bhav", att, v)
    out = out.transpose(0, 2, 1, 3).reshape(B, N, E)
    return lin(out, params["wp"], params["bp"])


if __name__ == "__main__":
    # Small shapes consistent with the module's forward: x is (batch, seq, emb).
    B, N, E, H = 2, 8, 32, 4

    key = jax.random.PRNGKey(0)
    kx, kp = jax.random.split(key)
    x = jax.random.normal(kx, (B, N, E), jnp.float32)
    params = _init_params(kp, E)

    out = ts_attention(x, params, num_heads=H)
    out = jax.block_until_ready(out)

    ref = _reference(x, params, H)
    assert out.shape == (B, N, E)
    # Tolerance accounts for the EUP approximate reciprocal in the softmax.
    assert jnp.allclose(out, ref, atol=2e-3, rtol=2e-3), "mismatch vs reference"

    print("KERNEL_OK")
</pallas_src>

<mosaic_0001>
module attributes {stable_mosaic.version = 11 : i64} {
  func.func @_mha_kernel(%arg0: i32, %arg1: i32, %arg2: memref<1x8x32xf32, #tpu.memory_space<vmem>>, %arg3: memref<32x96xf32, #tpu.memory_space<vmem>>, %arg4: memref<1x96xf32, #tpu.memory_space<vmem>>, %arg5: memref<32x32xf32, #tpu.memory_space<vmem>>, %arg6: memref<1x32xf32, #tpu.memory_space<vmem>>, %arg7: memref<1x8x32xf32, #tpu.memory_space<vmem>>, %arg8: memref<8x96xf32, #tpu.memory_space<vmem>>) attributes {dimension_semantics = [#tpu.dimension_semantics<parallel>, #tpu.dimension_semantics<arbitrary>], iteration_bounds = array<i64: 2, 1>, scalar_prefetch = 0 : i64, scratch_operands = 1 : i64, tpu.core_type = #tpu.core_type<tc>, window_params = [{transform_indices = @transform_0, window_bounds = array<i64: 1, 8, 32>}, {pipeline_mode = #tpu.pipeline_mode<synchronous>, transform_indices = @transform_1, window_bounds = array<i64: 32, 96>}, {pipeline_mode = #tpu.pipeline_mode<synchronous>, transform_indices = @transform_2, window_bounds = array<i64: 1, 96>}, {pipeline_mode = #tpu.pipeline_mode<synchronous>, transform_indices = @transform_3, window_bounds = array<i64: 32, 32>}, {pipeline_mode = #tpu.pipeline_mode<synchronous>, transform_indices = @transform_4, window_bounds = array<i64: 1, 32>}, {transform_indices = @transform_5, window_bounds = array<i64: 1, 8, 32>}]} {
    %c0_i32 = arith.constant 0 : i32
    %0 = arith.cmpi eq, %arg1, %c0_i32 : i32
    %1 = arith.extui %0 : i1 to i32
    %c0_i32_0 = arith.constant 0 : i32
    %2 = arith.cmpi ne, %1, %c0_i32_0 : i32
    scf.if %2 {
      %c0_33 = arith.constant 0 : index
      %c0_34 = arith.constant 0 : index
      %c0_35 = arith.constant 0 : index
      %92 = vector.load %arg2[%c0_33, %c0_34, %c0_35] : memref<1x8x32xf32, #tpu.memory_space<vmem>>, vector<1x8x32xf32>
      %93 = vector.shape_cast %92 : vector<1x8x32xf32> to vector<8x32xf32>
      %c0_36 = arith.constant 0 : index
      %c0_37 = arith.constant 0 : index
      %94 = vector.load %arg3[%c0_36, %c0_37] : memref<32x96xf32, #tpu.memory_space<vmem>>, vector<32x96xf32>
      %cst_38 = arith.constant dense<0.000000e+00> : vector<8x96xf32>
      %95 = tpu.matmul %93, %94, %cst_38 {dimension_numbers = #tpu.dot_dimension_numbers<[1], [0], [0], [1], [0, 0, 1, 1], [], []>} : vector<8x32xf32>, vector<32x96xf32>, vector<8x96xf32> -> vector<8x96xf32>
      %c0_39 = arith.constant 0 : index
      %c0_40 = arith.constant 0 : index
      %96 = vector.load %arg4[%c0_39, %c0_40] : memref<1x96xf32, #tpu.memory_space<vmem>>, vector<1x96xf32>
      %97 = vector.broadcast %96 : vector<1x96xf32> to vector<8x96xf32>
      %98 = arith.addf %95, %97 : vector<8x96xf32>
      %c0_41 = arith.constant 0 : index
      %c0_42 = arith.constant 0 : index
      %99 = vector.load %arg8[%c0_41, %c0_42] : memref<8x96xf32, #tpu.memory_space<vmem>>, vector<8x96xf32>
      tpu.vector_store %arg8[%c0_41, %c0_42], %98 {strides = array<i32>} : memref<8x96xf32, #tpu.memory_space<vmem>>, vector<8x96xf32>,
    } else {
    }
    %c0 = arith.constant 0 : index
    %c0_1 = arith.constant 0 : index
    %3 = vector.load %arg8[%c0, %c0_1] : memref<8x96xf32, #tpu.memory_space<vmem>>, vector<8x96xf32>
    %c0_2 = arith.constant 0 : index
    %c0_3 = arith.constant 0 : index
    %4 = vector.load %arg5[%c0_2, %c0_3] : memref<32x32xf32, #tpu.memory_space<vmem>>, vector<32x32xf32>
    %cst = arith.constant 0.000000e+00 : f32
    %5 = vector.broadcast %cst : f32 to vector<8x32xf32>
    %6 = vector.extract_strided_slice %3 {offsets = [0, 0], sizes = [8, 8], strides = [1, 1]} : vector<8x96xf32> to vector<8x8xf32>
    %7 = vector.extract_strided_slice %3 {offsets = [0, 32], sizes = [8, 8], strides = [1, 1]} : vector<8x96xf32> to vector<8x8xf32>
    %8 = vector.extract_strided_slice %3 {offsets = [0, 64], sizes = [8, 8], strides = [1, 1]} : vector<8x96xf32> to vector<8x8xf32>
    %cst_4 = arith.constant dense<0.000000e+00> : vector<8x8xf32>
    %9 = tpu.matmul %6, %7, %cst_4 {dimension_numbers = #tpu.dot_dimension_numbers<[1], [1], [0], [0], [0, 0, 1, 0], [], []>} : vector<8x8xf32>, vector<8x8xf32>, vector<8x8xf32> -> vector<8x8xf32>
    %cst_5 = arith.constant 0.176776692 : f32
    %10 = vector.broadcast %cst_5 : f32 to vector<8x8xf32>
    %11 = arith.mulf %9, %10 : vector<8x8xf32>
    %cst_6 = arith.constant dense<0xFF800000> : vector<8xf32>
    %12 = vector.multi_reduction <maximumf>, %11, %cst_6 [1] : vector<8x8xf32> to vector<8xf32>
    %13 = vector.shape_cast %12 : vector<8xf32> to vector<8x1xf32>
    %14 = vector.broadcast %13 : vector<8x1xf32> to vector<8x8xf32>
    %15 = arith.subf %11, %14 : vector<8x8xf32>
    %16 = math.exp %15 : vector<8x8xf32>
    %cst_7 = arith.constant dense<0.000000e+00> : vector<8xf32>
    %17 = vector.multi_reduction <add>, %16, %cst_7 [1] : vector<8x8xf32> to vector<8xf32>
    %18 = vector.shape_cast %17 : vector<8xf32> to vector<8x1xf32>
    %19 = tpu.reciprocal %18 {approx = true} : vector<8x1xf32> -> vector<8x1xf32>
    %20 = vector.broadcast %19 : vector<8x1xf32> to vector<8x8xf32>
    %21 = arith.mulf %16, %20 : vector<8x8xf32>
    %cst_8 = arith.constant dense<0.000000e+00> : vector<8x8xf32>
    %22 = tpu.matmul %21, %8, %cst_8 {dimension_numbers = #tpu.dot_dimension_numbers<[1], [0], [0], [1], [0, 0, 1, 1], [], []>} : vector<8x8xf32>, vector<8x8xf32>, vector<8x8xf32> -> vector<8x8xf32>
    %23 = vector.extract_strided_slice %4 {offsets = [0, 0], sizes = [8, 32], strides = [1, 1]} : vector<32x32xf32> to vector<8x32xf32>
    %cst_9 = arith.constant dense<0.000000e+00> : vector<8x32xf32>
    %24 = tpu.matmul %22, %23, %cst_9 {dimension_numbers = #tpu.dot_dimension_numbers<[1], [0], [0], [1], [0, 0, 1, 1], [], []>} : vector<8x8xf32>, vector<8x32xf32>, vector<8x32xf32> -> vector<8x32xf32>
    %25 = arith.addf %5, %24 : vector<8x32xf32>
    %26 = vector.extract_strided_slice %3 {offsets = [0, 8], sizes = [8, 8], strides = [1, 1]} : vector<8x96xf32> to vector<8x8xf32>
    %27 = vector.extract_strided_slice %3 {offsets = [0, 40], sizes = [8, 8], strides = [1, 1]} : vector<8x96xf32> to vector<8x8xf32>
    %28 = vector.extract_strided_slice %3 {offsets = [0, 72], sizes = [8, 8], strides = [1, 1]} : vector<8x96xf32> to vector<8x8xf32>
    %cst_10 = arith.constant dense<0.000000e+00> : vector<8x8xf32>
    %29 = tpu.matmul %26, %27, %cst_10 {dimension_numbers = #tpu.dot_dimension_numbers<[1], [1], [0], [0], [0, 0, 1, 0], [], []>} : vector<8x8xf32>, vector<8x8xf32>, vector<8x8xf32> -> vector<8x8xf32>
    %cst_11 = arith.constant 0.176776692 : f32
    %30 = vector.broadcast %cst_11 : f32 to vector<8x8xf32>
    %31 = arith.mulf %29, %30 : vector<8x8xf32>
    %cst_12 = arith.constant dense<0xFF800000> : vector<8xf32>
    %32 = vector.multi_reduction <maximumf>, %31, %cst_12 [1] : vector<8x8xf32> to vector<8xf32>
    %33 = vector.shape_cast %32 : vector<8xf32> to vector<8x1xf32>
    %34 = vector.broadcast %33 : vector<8x1xf32> to vector<8x8xf32>
    %35 = arith.subf %31, %34 : vector<8x8xf32>
    %36 = math.exp %35 : vector<8x8xf32>
    %cst_13 = arith.constant dense<0.000000e+00> : vector<8xf32>
    %37 = vector.multi_reduction <add>, %36, %cst_13 [1] : vector<8x8xf32> to vector<8xf32>
    %38 = vector.shape_cast %37 : vector<8xf32> to vector<8x1xf32>
    %39 = tpu.reciprocal %38 {approx = true} : vector<8x1xf32> -> vector<8x1xf32>
    %40 = vector.broadcast %39 : vector<8x1xf32> to vector<8x8xf32>
    %41 = arith.mulf %36, %40 : vector<8x8xf32>
    %cst_14 = arith.constant dense<0.000000e+00> : vector<8x8xf32>
    %42 = tpu.matmul %41, %28, %cst_14 {dimension_numbers = #tpu.dot_dimension_numbers<[1], [0], [0], [1], [0, 0, 1, 1], [], []>} : vector<8x8xf32>, vector<8x8xf32>, vector<8x8xf32> -> vector<8x8xf32>
    %43 = vector.extract_strided_slice %4 {offsets = [8, 0], sizes = [8, 32], strides = [1, 1]} : vector<32x32xf32> to vector<8x32xf32>
    %cst_15 = arith.constant dense<0.000000e+00> : vector<8x32xf32>
    %44 = tpu.matmul %42, %43, %cst_15 {dimension_numbers = #tpu.dot_dimension_numbers<[1], [0], [0], [1], [0, 0, 1, 1], [], []>} : vector<8x8xf32>, vector<8x32xf32>, vector<8x32xf32> -> vector<8x32xf32>
    %45 = arith.addf %25, %44 : vector<8x32xf32>
    %46 = vector.extract_strided_slice %3 {offsets = [0, 16], sizes = [8, 8], strides = [1, 1]} : vector<8x96xf32> to vector<8x8xf32>
    %47 = vector.extract_strided_slice %3 {offsets = [0, 48], sizes = [8, 8], strides = [1, 1]} : vector<8x96xf32> to vector<8x8xf32>
    %48 = vector.extract_strided_slice %3 {offsets = [0, 80], sizes = [8, 8], strides = [1, 1]} : vector<8x96xf32> to vector<8x8xf32>
    %cst_16 = arith.constant dense<0.000000e+00> : vector<8x8xf32>
    %49 = tpu.matmul %46, %47, %cst_16 {dimension_numbers = #tpu.dot_dimension_numbers<[1], [1], [0], [0], [0, 0, 1, 0], [], []>} : vector<8x8xf32>, vector<8x8xf32>, vector<8x8xf32> -> vector<8x8xf32>
    %cst_17 = arith.constant 0.176776692 : f32
    %50 = vector.broadcast %cst_17 : f32 to vector<8x8xf32>
    %51 = arith.mulf %49, %50 : vector<8x8xf32>
    %cst_18 = arith.constant dense<0xFF800000> : vector<8xf32>
    %52 = vector.multi_reduction <maximumf>, %51, %cst_18 [1] : vector<8x8xf32> to vector<8xf32>
    %53 = vector.shape_cast %52 : vector<8xf32> to vector<8x1xf32>
    %54 = vector.broadcast %53 : vector<8x1xf32> to vector<8x8xf32>
    %55 = arith.subf %51, %54 : vector<8x8xf32>
    %56 = math.exp %55 : vector<8x8xf32>
    %cst_19 = arith.constant dense<0.000000e+00> : vector<8xf32>
    %57 = vector.multi_reduction <add>, %56, %cst_19 [1] : vector<8x8xf32> to vector<8xf32>
    %58 = vector.shape_cast %57 : vector<8xf32> to vector<8x1xf32>
    %59 = tpu.reciprocal %58 {approx = true} : vector<8x1xf32> -> vector<8x1xf32>
    %60 = vector.broadcast %59 : vector<8x1xf32> to vector<8x8xf32>
    %61 = arith.mulf %56, %60 : vector<8x8xf32>
    %cst_20 = arith.constant dense<0.000000e+00> : vector<8x8xf32>
    %62 = tpu.matmul %61, %48, %cst_20 {dimension_numbers = #tpu.dot_dimension_numbers<[1], [0], [0], [1], [0, 0, 1, 1], [], []>} : vector<8x8xf32>, vector<8x8xf32>, vector<8x8xf32> -> vector<8x8xf32>
    %63 = vector.extract_strided_slice %4 {offsets = [16, 0], sizes = [8, 32], strides = [1, 1]} : vector<32x32xf32> to vector<8x32xf32>
    %cst_21 = arith.constant dense<0.000000e+00> : vector<8x32xf32>
    %64 = tpu.matmul %62, %63, %cst_21 {dimension_numbers = #tpu.dot_dimension_numbers<[1], [0], [0], [1], [0, 0, 1, 1], [], []>} : vector<8x8xf32>, vector<8x32xf32>, vector<8x32xf32> -> vector<8x32xf32>
    %65 = arith.addf %45, %64 : vector<8x32xf32>
    %66 = vector.extract_strided_slice %3 {offsets = [0, 24], sizes = [8, 8], strides = [1, 1]} : vector<8x96xf32> to vector<8x8xf32>
    %67 = vector.extract_strided_slice %3 {offsets = [0, 56], sizes = [8, 8], strides = [1, 1]} : vector<8x96xf32> to vector<8x8xf32>
    %68 = vector.extract_strided_slice %3 {offsets = [0, 88], sizes = [8, 8], strides = [1, 1]} : vector<8x96xf32> to vector<8x8xf32>
    %cst_22 = arith.constant dense<0.000000e+00> : vector<8x8xf32>
    %69 = tpu.matmul %66, %67, %cst_22 {dimension_numbers = #tpu.dot_dimension_numbers<[1], [1], [0], [0], [0, 0, 1, 0], [], []>} : vector<8x8xf32>, vector<8x8xf32>, vector<8x8xf32> -> vector<8x8xf32>
    %cst_23 = arith.constant 0.176776692 : f32
    %70 = vector.broadcast %cst_23 : f32 to vector<8x8xf32>
    %71 = arith.mulf %69, %70 : vector<8x8xf32>
    %cst_24 = arith.constant dense<0xFF800000> : vector<8xf32>
    %72 = vector.multi_reduction <maximumf>, %71, %cst_24 [1] : vector<8x8xf32> to vector<8xf32>
    %73 = vector.shape_cast %72 : vector<8xf32> to vector<8x1xf32>
    %74 = vector.broadcast %73 : vector<8x1xf32> to vector<8x8xf32>
    %75 = arith.subf %71, %74 : vector<8x8xf32>
    %76 = math.exp %75 : vector<8x8xf32>
    %cst_25 = arith.constant dense<0.000000e+00> : vector<8xf32>
    %77 = vector.multi_reduction <add>, %76, %cst_25 [1] : vector<8x8xf32> to vector<8xf32>
    %78 = vector.shape_cast %77 : vector<8xf32> to vector<8x1xf32>
    %79 = tpu.reciprocal %78 {approx = true} : vector<8x1xf32> -> vector<8x1xf32>
    %80 = vector.broadcast %79 : vector<8x1xf32> to vector<8x8xf32>
    %81 = arith.mulf %76, %80 : vector<8x8xf32>
    %cst_26 = arith.constant dense<0.000000e+00> : vector<8x8xf32>
    %82 = tpu.matmul %81, %68, %cst_26 {dimension_numbers = #tpu.dot_dimension_numbers<[1], [0], [0], [1], [0, 0, 1, 1], [], []>} : vector<8x8xf32>, vector<8x8xf32>, vector<8x8xf32> -> vector<8x8xf32>
    %83 = vector.extract_strided_slice %4 {offsets = [24, 0], sizes = [8, 32], strides = [1, 1]} : vector<32x32xf32> to vector<8x32xf32>
    %cst_27 = arith.constant dense<0.000000e+00> : vector<8x32xf32>
    %84 = tpu.matmul %82, %83, %cst_27 {dimension_numbers = #tpu.dot_dimension_numbers<[1], [0], [0], [1], [0, 0, 1, 1], [], []>} : vector<8x8xf32>, vector<8x32xf32>, vector<8x32xf32> -> vector<8x32xf32>
    %85 = arith.addf %65, %84 : vector<8x32xf32>
    %c0_28 = arith.constant 0 : index
    %c0_29 = arith.constant 0 : index
    %86 = vector.load %arg6[%c0_28, %c0_29] : memref<1x32xf32, #tpu.memory_space<vmem>>, vector<1x32xf32>
    %87 = vector.broadcast %86 : vector<1x32xf32> to vector<8x32xf32>
    %88 = arith.addf %85, %87 : vector<8x32xf32>
    %c0_30 = arith.constant 0 : index
    %c0_31 = arith.constant 0 : index
    %c0_32 = arith.constant 0 : index
    %89 = vector.load %arg7[%c0_30, %c0_31, %c0_32] : memref<1x8x32xf32, #tpu.memory_space<vmem>>, vector<1x8x32xf32>
    %90 = vector.shape_cast %89 : vector<1x8x32xf32> to vector<8x32xf32>
    %91 = vector.shape_cast %88 : vector<8x32xf32> to vector<1x8x32xf32>
    tpu.vector_store %arg7[%c0_30, %c0_31, %c0_32], %91 {strides = array<i32>} : memref<1x8x32xf32, #tpu.memory_space<vmem>>, vector<1x8x32xf32>,
    return
  }
  func.func @transform_0(%arg0: i32, %arg1: i32) -> (i32, i32, i32) {
    %c0_i32 = arith.constant 0 : i32
    %c0_i32_0 = arith.constant 0 : i32
    %c0_i32_1 = arith.constant 0 : i32
    return %arg0, %c0_i32, %c0_i32_0 : i32, i32, i32
  }
  func.func @transform_1(%arg0: i32, %arg1: i32) -> (i32, i32) {
    %c0_i32 = arith.constant 0 : i32
    %c0_i32_0 = arith.constant 0 : i32
    %c0_i32_1 = arith.constant 0 : i32
    return %c0_i32, %c0_i32_0 : i32, i32
  }
  func.func @transform_2(%arg0: i32, %arg1: i32) -> (i32, i32) {
    %c0_i32 = arith.constant 0 : i32
    %c0_i32_0 = arith.constant 0 : i32
    %c0_i32_1 = arith.constant 0 : i32
    return %c0_i32, %c0_i32_0 : i32, i32
  }
  func.func @transform_3(%arg0: i32, %arg1: i32) -> (i32, i32) {
    %c0_i32 = arith.constant 0 : i32
    %c0_i32_0 = arith.constant 0 : i32
    %c0_i32_1 = arith.constant 0 : i32
    return %c0_i32, %c0_i32_0 : i32, i32
  }
  func.func @transform_4(%arg0: i32, %arg1: i32) -> (i32, i32) {
    %c0_i32 = arith.constant 0 : i32
    %c0_i32_0 = arith.constant 0 : i32
    %c0_i32_1 = arith.constant 0 : i32
    return %c0_i32, %c0_i32_0 : i32, i32
  }
  func.func @transform_5(%arg0: i32, %arg1: i32) -> (i32, i32, i32) {
    %c0_i32 = arith.constant 0 : i32
    %c0_i32_0 = arith.constant 0 : i32
    return %arg0, %arg1, %c0_i32 : i32, i32, i32
  }
}

</mosaic_0001>

<bundles_post_ra>
// kernel: tpu_custom_call.1
= control target key start
LH: loop header
LB: loop body
LE: loop exit
PB: predicated region body
PF: predicated region fallthrough
CT: control target
= control target key end

     0   :  { %s2192_s0 = inlined_call_operand.hbm [shape: f32[2,8,32], index: 0, kind: input, shape index: {}]   ;;  %s2193_s1 = inlined_call_operand.hbm [shape: f32[32,96], index: 1, kind: input, shape index: {}]   ;;  %s2194_s2 = inlined_call_operand.vmem [shape: f32[1,96], index: 2, kind: input, shape index: {}]   ;;  %s2195_s3 = inlined_call_operand.hbm [shape: f32[32,32], index: 3, kind: input, shape index: {}]   ;;  %s2196_s4 = inlined_call_operand.vmem [shape: f32[1,32], index: 4, kind: input, shape index: {}]   ;;  %s2197_s5 = inlined_call_operand.hbm [shape: f32[2,8,32], index: 5, kind: output, shape index: {}]  }
   0x1   :  { %2201 = sst [smem:[#allocation13_spill]] %s2193_s1 }
   0x2   :  { %10 = vsyncpa [#allocation4], 0 }
   0x3   :  { %12 = vsyncpa [#allocation4 + $0x1], 0 }
   0x4   :  { %13 = vsyncpa [#allocation7], 0 }
   0x5   :  { %14 = vsyncpa [#allocation5], 0 }
   0x6   :  { %16 = vsyncpa [#allocation5 + $0x1], 0  ;;  %s1926_s18 = smov 0   ;;  %s1928_s19 = smov 0  }
   0x7   :  { %s1930_s20 = smov 0   ;;  %s1932_s21 = smov 0  }
   0x8   :  { %s1934_s22 = smov 0   ;;  %s1936_s23 = smov 0  }
   0x9 LB: > { %s1461_s24 = sadd.s32 4294967295, %s1875_s23   ;;  %s1462_s25 = sadd.s32 4294967294, %s1875_s23   ;;  %s1875_s23 = sphi %s1936_s23, %s22_s23   ;;  %s1871_s22 = sphi %s1934_s22, %s2219_s22   ;;  %s1867_s21 = sphi %s1932_s21, %s2218_s21   ;;  %s1863_s20 = sphi %s1930_s20, %s2217_s20   ;;  %s1859_s19 = sphi %s1928_s19, %s2216_s19   ;;  %s1855_s18 = sphi %s1926_s18, %s2215_s18  }
   0xa   : > { %p54_p0 = scmp.ne.s32.totalorder %s1859_s19, %s1855_s18  ;;  %p1960_p1 = scmp.eq.s32.totalorder %s1461_s24, 0 }
   0xb   : > { %p1964_p2 = scmp.eq.s32.totalorder %s1461_s24, 1  ;;  %p170_p3 = scmp.eq.s32.totalorder %s1462_s25, 1 }
   0xc   : > { %s2202_s26 = scalar_select %p1960_p1, 1, 0 }
   0xd   : > { %p1970_p4 = por %p1960_p1, %p54_p0  ;;  %p1463_p5 = scmp.ge.s32.totalorder %s1875_s23, 1 }
   0xe   : > { %p1975_p6 = por %p170_p3, %p54_p0  ;;  %p177_p7 = scmp.lt.s32.totalorder %s1875_s23, 3 }
   0xf   : > { %s2204_s28 = scalar_select %p1970_p4, 1, 0 }
  0x10   : > { %s2205_s29 = scalar_select %p1975_p6, 1, 0 }
  0x11   : > { %p1980_p8 = pnand %p1463_p5, %p177_p7  ;;  %s1877_s6 = smov [#allocation6]  }
  0x12   : > { %s189_s7 = sshll.u32 %s1877_s6, 4  ;;  %s1878_s9 = smov [#allocation8]   ;;  %s190_s7 = int_to_ptr.vmem [resolvable:$true] %s189_s7 }
  0x13   : > { %p1609_p9 = pneg %p1980_p8  ;;  %s205_s10 = sshll.u32 %s1878_s9, 4  ;;  %s206_s10 = int_to_ptr.vmem [resolvable:$true] %s205_s10 }
  0x14   : > { %s1722_s11 = scalar_lea.vmem %s190_s7, 512  ;;  %p1730_p5 = scmp.lt.s32.totalorder %s190_s7, %s190_s7 }
  0x15   : > { %p1989_p11 = pnand %p1609_p9, %p1960_p1  ;;  %p1723_p13 = scmp.ne.s32.totalorder %s190_s7, %s1722_s11 }
  0x16   : > { %p1731_p7 = scmp.lt.s32.totalorder %s1722_s11, %s1722_s11 }
  0x17   : > { %p1713_p12 = pneg %p1989_p11 }
  0x18   : > { %p1732_p10 = por %p1731_p7, %p1730_p5 }
  0x19   : > { %p1725_p0 = pnand %p1723_p13, %p1713_p12 }
  0x1b   : > { %p1726_p3 = pneg %p1725_p0 }
  0x1d   : > { %p1733_p9 = pnand %p1732_p10, %p1726_p3 }
  0x1f   : > { %1736 = shalt.err (!%p1733_p9)
}
  0x20   : > { %s1879_s12 = smov 128   ;;  %s1880_s13 = smov 8  }
  0x21   : > { %s2208_s1 = sld [smem:[#allocation13_spill]]  ;;  %s1748_s16 = scalar_lea.vmem %s206_s10, 512 }
  0x22   : > { %p1749_p6 = scmp.ne.s32.totalorder %s206_s10, %s1748_s16  ;;  %p1756_p1 = scmp.lt.s32.totalorder %s206_s10, %s206_s10 }
  0x23   : > { %p1757_p4 = scmp.lt.s32.totalorder %s1748_s16, %s1748_s16 }
  0x24   : > { %p1751_p13 = pnand %p1749_p6, %p1713_p12 }
  0x25   : > { %p1758_p5 = por %p1757_p4, %p1756_p1 }
  0x26   : > { %p1752_p0 = pneg %p1751_p13 }
  0x27   : > { %1612 = dma.hbm_to_vmem [thread:$0]  (!%p1989_p11), %s2208_s1, 512, %s190_s7, [#allocation7], %s1879_s12, %s1879_s12, %s1880_s13  }
  0x28   : > { %p1759_p10 = pnand %p1758_p5, %p1752_p0 }
  0x2a   : > { %1762 = shalt.err (!%p1759_p10)
}
  0x2b   : > { %1615 = dma.hbm_to_vmem [thread:$0]  (!%p1989_p11), %s2195_s3, 512, %s206_s10, [#allocation7], %s1879_s12, %s1879_s12, %s1880_s13  }
  0x2c   : > { %s34_s25 = sadd.s32 1, %s1871_s22  ;;  %s41_s6 = sadd.s32 1, %s1863_s20 }
  0x2d   : > { %p36_p1 = scmp.ge.s32.totalorder %s34_s25, 2  ;;  %p48_p4 = scmp.ne.s32.totalorder %s1863_s20, %s1859_s19 }
  0x2e   : > { %p49_p6 = scmp.eq.s32.totalorder %s1875_s23, 0  ;;  %p1626_p12 = scmp.lt.s32.totalorder %s1875_s23, 2 }
  0x2f   : > { %s2221_s25 = smov (%p36_p1, %s34_s25), 0  ;;  %p2021_p7 = por %p1964_p2, %p48_p4 }
  0x30   : > { %p50_p3 = por %p49_p6, %p48_p4  ;;  %s38_s8 = ssub.s32 %s1871_s22, %s2221_s25 }
  0x31   : > { %s222_s9 = sand.u32 1, %s1863_s20   ;;  %p39_p9 = scmp.eq.s32.totalorder %s38_s8, 0 }
  0x32   : > { %s1467_s10 = sshll.u32 %s222_s9, 3  ;;  %s1468_s11 = sshll.u32 %s1871_s22, 7 }
  0x33   : > { %s2030_s12 = scalar_select %p39_p9, %s1863_s20, %s41_s6  }
  0x34   : > { %s231_s15 = scalar_lea.hbm %s2192_s0, %s1468_s11  ;;  %s226_s16 = scalar_lea.vmem [#allocation3], %s1467_s10 }
  0x35   : > { %s233_s17 = sshll.u32 %s226_s16, 4  ;;  %p2037_p11 = pnand %p1626_p12, %p50_p3  ;;  %s234_s17 = int_to_ptr.vmem [resolvable:$true] %s233_s17 }
  0x36   : > { %s223_s24 = scalar_lea.sflag [#allocation4], %s222_s9  ;;  %s1776_s8 = scalar_lea.vmem %s234_s17, 128 }
  0x37   : > { %p1765_p2 = pneg %p2037_p11  ;;  %p1777_p13 = scmp.ne.s32.totalorder %s234_s17, %s1776_s8 }
  0x38   : > { %s1881_s6 = smov [#allocation3]  }
  0x39   : > { %p1779_p0 = pnand %p1777_p13, %p1765_p2  ;;  %s1781_s1 = sshll.u32 %s1881_s6, 4  ;;  %s1782_s1 = int_to_ptr.vmem [resolvable:$false] %s1781_s1 }
  0x3a   : > { %s1783_s11 = scalar_lea.vmem %s1782_s1, 256  ;;  %p1784_p10 = scmp.lt.s32.totalorder %s234_s17, %s1782_s1 }
  0x3b   : > { %p1780_p5 = pneg %p1779_p0  ;;  %p1785_p1 = scmp.lt.s32.totalorder %s1783_s11, %s1776_s8 }
  0x3d   : > { %p1786_p4 = por %p1785_p1, %p1784_p10 }
  0x3f   : > { %p1787_p6 = pnand %p1786_p4, %p1780_p5 }
  0x41   : > { %1790 = shalt.err (!%p1787_p6)
}
  0x42   : > { %1619 = dma.hbm_to_vmem [thread:$0]  (!%p2037_p11), %s231_s15, 128, %s234_s17, %s223_s24  }
  0x43   : > { %242 = sbr.rel (%p1980_p8) target bundleno = 2536 (0x9e8), region = 40  ;;  %s2048_s9 = sand.u32 (!%p1980_p8), 1, %s1859_s19  }
  0x44   : > { %s1470_s10 = sshll.u32 (!%p1980_p8), %s2048_s9, 3  ;;  %s245_s13 = scalar_lea.sflag (!%p1980_p8), [#allocation4], %s2048_s9 }
  0x45   : > { %s248_s1 = scalar_lea.vmem (!%p1980_p8), [#allocation3], %s1470_s10  ;;  %p2211_p12 = scmp.ne.s32.totalorder (!%p1980_p8), %s2204_s28, 0 }
  0x48   : > { %1842 = dma.done.wait (%p2211_p12), %s245_s13, 128  }
  0x49   : > { %1844 = vsyncadd (%p2211_p12), %s245_s13, 4294967168  ;;  %p2212_p3 = scmp.ne.s32.totalorder %s2202_s26, 0 }
  0x4b   : > { %1846 = dma.done.wait (%p2212_p3), [#allocation7], 1024  }
  0x4c   : > { %1848 = vsyncadd (%p2212_p3), [#allocation7], 4294966272  ;;  %v1882_v0 = vmov 0.0   ;;  %vm1883_vm0 = vmmov 0   ;;  %v291_v1 = vld [vmem:[#allocation6 + $0x18] sm:$0xff]  ;;  %v290_v2 = vld [vmem:[#allocation6 + $0x10] sm:$0xff] }
  0x4d   : > { %1526 = vmatprep.subr.mxu0 %v1882_v0  ;;  %1534 = vmatprep.mubr.msk.f32.mxu0 %vm1883_vm0, %v1882_v0  ;;  %v289_v3 = vld [vmem:[#allocation6 + $0x8] sm:$0xff]  ;;  %v288_v4 = vld [vmem:[#allocation6] sm:$0xff]  ;;  %v287_v5 = vld [vmem:[%s248_s1] sm:$0xff]  ;;  %vm299_vm1 = vcmask 261120   ;;  %vm373_vm2 = vcmask 785408   ;;  %s1884_s30 = smov 120  }
  0x4e   : > { %1537 = vmatprep.subr.mxu1 %v1882_v0  ;;  %1539 = vmatprep.mubr.msk.f32.mxu1 %vm1883_vm0, %v1882_v0  ;;  %v1474_v6 = vld [vmem:[%s2194_s2] ss:$0 sm:$0xff]  ;;  %s1885_s14 = smov 96   ;;  %s1886_s15 = smov 88   ;;  %vm383_vm3 = vcmask 64512   ;;  %v376_v40 = vld [vmem:[#allocation8] sm:$0xff] }
  0x4f   : > { %1527 = vmatpush3.msra.mxu0 %v291_v1  ;;  %s1887_s16 = smov 56   ;;  %s1888_s17 = smov 64   ;;  %v377_v41 = vld [vmem:[#allocation8 + $0x8] sm:$0xff] }
  0x50   : > { %1528 = vmatprep.subr.mxu0 %v1882_v0  ;;  %s1889_s27 = smov 80   ;;  %s1890_s24 = smov 112  }
  0x51   : > { %1529 = vmatpush3.msra.mxu0 %v290_v2  ;;  %s1891_s8 = smov 72   ;;  %s1892_s6 = smov 104  }
  0x52   : > { %1530 = vmatprep.subr.mxu0 %v1882_v0  ;;  %s1893_s11 = smov 48   ;;  %s1894_s13 = smov 40  }
  0x53   : > { %1531 = vmatpush3.msra.mxu0 %v289_v3  ;;  %s1494_s28 = sshll.u32 %s1867_s21, 7  ;;  %s1895_s21 = smov [#allocation9]  }
  0x54   : > { %1532 = vmatprep.subr.mxu0 %v1882_v0 }
  0x55   : > { %1533 = vmatpush3.msra.mxu0 %v288_v4 }
  0x56   : > { %1535 = vmatmul.mubr.msk.f32.vlgmr.msra.gmra.mxu0 %vm299_vm1, %v287_v5  ;;  %1547 = vmatprep.subr.mxu0 %v1882_v0  ;;  %v378_v5 = vld [vmem:[#allocation8 + $0x10] sm:$0xff] }
  0x57   : > { %1549 = vmatprep.mubr.msk.f32.mxu0 %vm1883_vm0, %v1882_v0 }
 0x116   : > { %v369_v7 = vpop.f32.mrf.mxu0 }
 0x117   : > { %v370_v8 = vadd.f32 %v1474_v6, %v369_v7 }
 0x118   : > { %v1536_v9 = vpop.f32.mrf.mxu0 }
 0x119   : > { %374 = vst.msk [vmem:[#allocation2] sm:$0xff] %vm373_vm2, %v370_v8 }
 0x120   : > { %v2078_v10 = vld [vmem:[#allocation2] sm:$0xff] }
 0x121   : > { %546 = vrot.lane.b32.xlu1 %v2078_v10, %s1884_s30  ;;  %381 = vrot.lane.b32.xlu0 %v2078_v10, %s1885_s14  ;;  %s282_s30 = scalar_lea.vmem [#allocation9], %s1470_s10 }
 0x122   : > { %s1363_s14 = sshll.u32 %s282_s30, 4  ;;  %s1364_s14 = int_to_ptr.vmem [resolvable:$true] %s1363_s14 }
 0x125   : > { %548 = vrot.lane.b32.xlu0 %v2078_v10, %s1886_s15 }
 0x193   : > { %v382_v11 = vpop.permute.xlu0 %381  ;;  %v547_v13 = vpop.permute.xlu1 %546 }
 0x194   : > { %1538 = vmatpush3.xpose.msk.msra.mxu1 %vm383_vm3, %v382_v11 }
 0x195   : > { %1542 = vmatprep.subr.mxu1 %v1882_v0 }
 0x197   : > { %1540 = vmatmul.mubr.msk.f32.vlgmr.msra.gmra.mxu1 %vm383_vm3, %v2078_v10  ;;  %v549_v12 = vpop.permute.xlu0 %548 }
 0x198   : > { %1548 = vmatpush3.xpose.msk.msra.mxu0 %vm383_vm3, %v549_v12  ;;  %1544 = vmatprep.mubr.msk.f32.mxu1 %vm1883_vm0, %v1882_v0 }
 0x199   : > { %1557 = vmatprep.subr.mxu0 %v1882_v0 }
 0x19b   : > { %1550 = vmatmul.mubr.msk.f32.vlgmr.msra.gmra.mxu0 %vm383_vm3, %v547_v13 }
 0x19c   : > { %1559 = vmatprep.mubr.msk.f32.mxu0 %vm1883_vm0, %v1882_v0  ;;  %1558 = vmatpush3.msra.mxu0 %v377_v41 }
 0x19d   : > { %1567 = vmatprep.subr.mxu0 %v1882_v0 }
 0x257   : > { %v454_v14 = vpop.f32.mrf.mxu1 }
 0x258   : > { %v458_v15 = vmul.f32 0.17677669, %v454_v14 }
 0x259   : > { %v1541_v16 = vpop.f32.mrf.mxu1 }
 0x25a   : > { %v459_v17 = vsel %vm383_vm3, %v458_v15, -inf }
 0x25b   : > { %460 = vmax.xlane.f32.xlu1 %v459_v17  ;;  %v620_v18 = vpop.f32.mrf.mxu0 }
 0x25c   : > { %v624_v19 = vmul.f32 0.17677669, %v620_v18 }
 0x25d   : > { %v1551_v20 = vpop.f32.mrf.mxu0 }
 0x25e   : > { %v625_v21 = vsel %vm383_vm3, %v624_v19, -inf }
 0x25f   : > { %626 = vmax.xlane.f32.xlu0 %v625_v21 }
 0x2e4   : > { %v461_v22 = vpop.xlane.xlu1 %460 }
 0x2e5   : > { %v462_v23 = vsub.f32 %v458_v15, %v461_v22 }
 0x2e7   : > { %v463_v24 = vmul.f32 1.442695, %v462_v23 }
 0x2e8   : > { %v627_v25 = vpop.xlane.xlu0 %626 }
 0x2e9   : > { %1695 = vpow2.f32 %v463_v24  ;;  %v628_v26 = vsub.f32 %v624_v19, %v627_v25 }
 0x2eb   : > { %v629_v27 = vmul.f32 1.442695, %v628_v26 }
 0x2ed   : > { %1697 = vpow2.f32 %v629_v27  ;;  %v1492_v27 = vld [vmem:[%s2196_s4] ss:$0 sm:$0xff] }
 0x2f6   : > { %v1696_v28 = vpop.eup %1695 }
 0x2f7   : > { %v465_v29 = vsel %vm383_vm3, %v1696_v28, 0.0 }
 0x2f8   : > { %466 = vadd.xlane.f32.xlu0 %v465_v29 }
 0x2fa   : > { %v1698_v30 = vpop.eup %1697 }
 0x2fb   : > { %v631_v31 = vsel %vm383_vm3, %v1698_v30, 0.0 }
 0x2fc   : > { %632 = vadd.xlane.f32.xlu1 %v631_v31 }
 0x30d   : > { %636 = vrot.lane.b32.xlu1 %v2078_v10, %s1887_s16 }
 0x30e   : > { %470 = vrot.lane.b32.xlu0 %v2078_v10, %s1888_s17  ;;  %s1361_s17 = scalar_lea.hbm %s2197_s5, %s1494_s28 }
 0x311   : > { %860 = vrot.lane.b32.xlu1 %v2078_v10, %s1889_s27  ;;  %s1349_s27 = scalar_lea.sflag [#allocation5], %s2048_s9 }
 0x312   : > { %858 = vrot.lane.b32.xlu0 %v2078_v10, %s1890_s24  ;;  %s1791_s24 = scalar_lea.vmem %s1364_s14, 128 }
 0x313   : > { %p1792_p8 = scmp.ne.s32.totalorder %s1364_s14, %s1791_s24 }
 0x315   : > { %p1793_p9 = pnand %p1792_p8, %p2021_p7 }
 0x317   : > { %p1794_p11 = pneg %p1793_p9 }
 0x381   : > { %v467_v32 = vpop.xlane.xlu0 %466 }
 0x382   : > { %1699 = vrcp.f32 %v467_v32 }
 0x385   : > { %v633_v33 = vpop.xlane.xlu1 %632  ;;  %v471_v34 = vpop.permute.xlu0 %470 }
 0x386   : > { %1701 = vrcp.f32 %v633_v33  ;;  %1543 = vmatpush3.msra.mxu1 %v471_v34 }
 0x387   : > { %1552 = vmatprep.subr.mxu1 %v1882_v0 }
 0x389   : > { %v637_v37 = vpop.permute.xlu1 %636  ;;  %v859_v47 = vpop.permute.xlu0 %858 }
 0x38d   : > { %v861_v45 = vpop.permute.xlu1 %860 }
 0x38f   : > { %v1700_v35 = vpop.eup %1699 }
 0x390   : > { %v469_v36 = vmul.f32 %v1700_v35, %v1696_v28 }
 0x392   : > { %1545 = vmatmul.mubr.msk.f32.vlgmr.msra.gmra.mxu1 %vm383_vm3, %v469_v36 }
 0x393   : > { %v1702_v38 = vpop.eup %1701  ;;  %1553 = vmatpush3.msra.mxu1 %v637_v37  ;;  %1554 = vmatprep.mubr.msk.f32.mxu1 %vm1883_vm0, %v1882_v0 }
 0x394   : > { %v635_v39 = vmul.f32 %v1702_v38, %v1698_v30  ;;  %1562 = vmatprep.subr.mxu1 %v1882_v0 }
 0x396   : > { %1555 = vmatmul.mubr.msk.f32.vlgmr.msra.gmra.mxu1 %vm383_vm3, %v635_v39 }
 0x397   : > { %1564 = vmatprep.mubr.msk.f32.mxu1 %vm1883_vm0, %v1882_v0  ;;  %1563 = vmatpush3.msra.mxu1 %v376_v40 }
 0x398   : > { %1572 = vmatprep.subr.mxu1 %v1882_v0 }
 0x452   : > { %v542_v42 = vpop.f32.mrf.mxu1 }
 0x453   : > { %1565 = vmatmul.mubr.msk.f32.vlgmr.msra.gmra.mxu1 %vm383_vm3, %v542_v42 }
 0x454   : > { %v1546_v43 = vpop.f32.mrf.mxu1  ;;  %1574 = vmatprep.mubr.msk.f32.mxu1 %vm1883_vm0, %v1882_v0 }
 0x456   : > { %v708_v44 = vpop.f32.mrf.mxu1 }
 0x457   : > { %1560 = vmatmul.mubr.msk.f32.vlgmr.msra.gmra.mxu0 %vm383_vm3, %v708_v44 }
 0x458   : > { %1568 = vmatpush3.xpose.msk.msra.mxu0 %vm383_vm3, %v861_v45  ;;  %v1556_v46 = vpop.f32.mrf.mxu1  ;;  %1569 = vmatprep.mubr.msk.f32.mxu0 %vm1883_vm0, %v1882_v0 }
 0x459   : > { %1577 = vmatprep.subr.mxu0 %v1882_v0 }
 0x45b   : > { %1570 = vmatmul.mubr.msk.f32.vlgmr.msra.gmra.mxu0 %vm383_vm3, %v859_v47 }
 0x45c   : > { %1579 = vmatprep.mubr.msk.f32.mxu0 %vm1883_vm0, %v1882_v0  ;;  %1578 = vmatpush3.msra.mxu0 %v378_v5 }
 0x45d   : > { %1587 = vmatprep.subr.mxu0 %v1882_v0 }
 0x513   : > { %v854_v48 = vpop.f32.mrf.mxu1 }
 0x515   : > { %v1566_v49 = vpop.f32.mrf.mxu1 }
 0x517   : > { %v781_v50 = vpop.f32.mrf.mxu0 }
 0x518   : > { %v855_v51 = vadd.f32 %v854_v48, %v781_v50 }
 0x519   : > { %v1561_v52 = vpop.f32.mrf.mxu0 }
 0x51b   : > { %v932_v53 = vpop.f32.mrf.mxu0 }
 0x51c   : > { %v936_v54 = vmul.f32 0.17677669, %v932_v53 }
 0x51d   : > { %v1571_v55 = vpop.f32.mrf.mxu0 }
 0x51e   : > { %v937_v56 = vsel %vm383_vm3, %v936_v54, -inf }
 0x51f   : > { %938 = vmax.xlane.f32.xlu1 %v937_v56 }
 0x530   : > { %1100 = vrot.lane.b32.xlu1 %v2078_v10, %s1891_s8  ;;  %s1795_s8 = sshll.u32 %s1895_s21, 4  ;;  %s1796_s8 = int_to_ptr.vmem [resolvable:$false] %s1795_s8 }
 0x531   : > { %s1797_s10 = scalar_lea.vmem %s1796_s8, 256  ;;  %p1798_p2 = scmp.lt.s32.totalorder %s1364_s14, %s1796_s8 }
 0x532   : > { %p1799_p13 = scmp.lt.s32.totalorder %s1797_s10, %s1791_s24 }
 0x534   : > { %1098 = vrot.lane.b32.xlu1 %v2078_v10, %s1892_s6  ;;  %p1800_p0 = por %p1799_p13, %p1798_p2 }
 0x536   : > { %p1801_p5 = pnand %p1800_p0, %p1794_p11 }
 0x5a8   : > { %v939_v57 = vpop.xlane.xlu1 %938 }
 0x5a9   : > { %v940_v58 = vsub.f32 %v936_v54, %v939_v57 }
 0x5ab   : > { %v941_v59 = vmul.f32 1.442695, %v940_v58 }
 0x5ac   : > { %v1101_v2 = vpop.permute.xlu1 %1100 }
 0x5ad   : > { %1703 = vpow2.f32 %v941_v59 }
 0x5b0   : > { %v1099_v4 = vpop.permute.xlu1 %1098 }
 0x5ba   : > { %v1704_v60 = vpop.eup %1703 }
 0x5bb   : > { %v943_v61 = vsel %vm383_vm3, %v1704_v60, 0.0 }
 0x5bc   : > { %944 = vadd.xlane.f32.xlu0 %v943_v61 }
 0x5d2   : > { %948 = vrot.lane.b32.xlu0 %v2078_v10, %s1893_s11 }
 0x645   : > { %v945_v62 = vpop.xlane.xlu0 %944 }
 0x646   : > { %1705 = vrcp.f32 %v945_v62 }
 0x649   : > { %v949_v63 = vpop.permute.xlu0 %948 }
 0x64a   : > { %1573 = vmatpush3.msra.mxu1 %v949_v63 }
 0x64b   : > { %1582 = vmatprep.subr.mxu1 %v1882_v0 }
 0x653   : > { %v1706_v1 = vpop.eup %1705 }
 0x654   : > { %v947_v3 = vmul.f32 %v1706_v1, %v1704_v60 }
 0x656   : > { %1575 = vmatmul.mubr.msk.f32.vlgmr.msra.gmra.mxu1 %vm383_vm3, %v947_v3 }
 0x657   : > { %1583 = vmatpush3.xpose.msk.msra.mxu1 %vm383_vm3, %v1101_v2  ;;  %1584 = vmatprep.mubr.msk.f32.mxu1 %vm1883_vm0, %v1882_v0 }
 0x658   : > { %1592 = vmatprep.subr.mxu1 %v1882_v0 }
 0x65a   : > { %1585 = vmatmul.mubr.msk.f32.vlgmr.msra.gmra.mxu1 %vm383_vm3, %v1099_v4 }
 0x65b   : > { %1594 = vmatprep.mubr.msk.f32.mxu1 %vm1883_vm0, %v1882_v0 }
 0x716   : > { %v1020_v6 = vpop.f32.mrf.mxu1 }
 0x717   : > { %1580 = vmatmul.mubr.msk.f32.vlgmr.msra.gmra.mxu0 %vm383_vm3, %v1020_v6 }
 0x718   : > { %v1576_v7 = vpop.f32.mrf.mxu1  ;;  %1589 = vmatprep.mubr.msk.f32.mxu0 %vm1883_vm0, %v1882_v0  ;;  %v379_v0 = vld [vmem:[#allocation8 + $0x18] sm:$0xff] }
 0x719   : > { %1593 = vmatpush3.msra.mxu1 %v379_v0 }
 0x71a   : > { %v1172_v8 = vpop.f32.mrf.mxu1 }
 0x71b   : > { %v1176_v9 = vmul.f32 0.17677669, %v1172_v8 }
 0x71c   : > { %v1586_v11 = vpop.f32.mrf.mxu1 }
 0x71d   : > { %v1177_v12 = vsel %vm383_vm3, %v1176_v9, -inf }
 0x71e   : > { %1178 = vmax.xlane.f32.xlu0 %v1177_v12 }
 0x734   : > { %1188 = vrot.lane.b32.xlu0 %v2078_v10, %s1894_s13 }
 0x7a7   : > { %v1179_v13 = vpop.xlane.xlu0 %1178 }
 0x7a8   : > { %v1180_v14 = vsub.f32 %v1176_v9, %v1179_v13 }
 0x7aa   : > { %v1181_v15 = vmul.f32 1.442695, %v1180_v14 }
 0x7ab   : > { %v1189_v16 = vpop.permute.xlu0 %1188 }
 0x7ac   : > { %1707 = vpow2.f32 %v1181_v15  ;;  %1588 = vmatpush3.msra.mxu0 %v1189_v16 }
 0x7b9   : > { %v1708_v17 = vpop.eup %1707 }
 0x7ba   : > { %v1183_v18 = vsel %vm383_vm3, %v1708_v17, 0.0 }
 0x7bb   : > { %1184 = vadd.xlane.f32.xlu1 %v1183_v18 }
 0x7d7   : > { %v1093_v19 = vpop.f32.mrf.mxu0 }
 0x7d8   : > { %v1097_v20 = vadd.f32 %v1093_v19, %v855_v51 }
 0x7d9   : > { %v1581_v21 = vpop.f32.mrf.mxu0 }
 0x844   : > { %v1185_v22 = vpop.xlane.xlu1 %1184 }
 0x845   : > { %1709 = vrcp.f32 %v1185_v22 }
 0x852   : > { %v1710_v10 = vpop.eup %1709 }
 0x853   : > { %v1187_v23 = vmul.f32 %v1710_v10, %v1708_v17 }
 0x855   : > { %1590 = vmatmul.mubr.msk.f32.vlgmr.msra.gmra.mxu0 %vm383_vm3, %v1187_v23 }
 0x915   : > { %v1260_v24 = vpop.f32.mrf.mxu0 }
 0x916   : > { %1595 = vmatmul.mubr.msk.f32.vlgmr.msra.gmra.mxu1 %vm383_vm3, %v1260_v24 }
 0x917   : > { %v1591_v25 = vpop.f32.mrf.mxu0 }
 0x9d6   : > { %v1333_v26 = vpop.f32.mrf.mxu1 }
 0x9d7   : > { %v1337_v28 = vadd.f32 %v1333_v26, %v1097_v20 }
 0x9d8   : > { %v1596_v29 = vpop.f32.mrf.mxu1 }
 0x9d9   : > { %v1345_v30 = vadd.f32 %v1492_v27, %v1337_v28 }
 0x9db   : > { %1347 = vst.msk [vmem:[%s282_s30] sm:$0xff] %vm299_vm1, %v1345_v30 }
 0x9dc   : > { %1804 = shalt.err (!%p1801_p5)
}
 0x9dd   : > { %s1805_s6 = scalar_lea.hbm %s1361_s17, 128  ;;  %s1809_s13 = scalar_lea.hbm %s2197_s5, 256 }
 0x9de   : > { %p1806_p10 = scmp.ne.s32.totalorder %s1361_s17, %s1805_s6  ;;  %p1810_p6 = scmp.lt.s32.totalorder %s1361_s17, %s2197_s5 }
 0x9df   : > { %p1811_p12 = scmp.lt.s32.totalorder %s1809_s13, %s1805_s6 }
 0x9e0   : > { %p1807_p1 = pnand %p1806_p10, %p2021_p7 }
 0x9e1   : > { %p1812_p3 = por %p1811_p12, %p1810_p6 }
 0x9e2   : > { %p1808_p4 = pneg %p1807_p1 }
 0x9e4   : > { %p1813_p8 = pnand %p1812_p3, %p1808_p4 }
 0x9e6   : > { %1816 = shalt.err (!%p1813_p8)
}
 0x9e7   : > { %1607 = dma.vmem_to_hbm [thread:$0]  (%p2021_p7), %s1364_s14, 128, %s1361_s17, %s1349_s27  }
 0x9e8 PF: > { %s1375_s28 = sand.u32 1, %s1855_s18   ;;  %p2213_p9 = scmp.ne.s32.totalorder %s2205_s29, 0 }
 0x9e9   : > { %p2214_p11 = scmp.ge.s32.totalorder %s1875_s23, 2  ;;  %s1376_s30 = scalar_lea.sflag [#allocation5], %s1375_s28 }
 0x9eb   : > { %p1621_p2 = pnand %p2214_p11, %p2213_p9 }
 0x9ed   : > { %p1622_p13 = pneg %p1621_p2 }
 0x9ef   : > { %1850 = dma.done.wait (%p1622_p13), %s1376_s30, 128  }
 0x9f0   : > { %1852 = vsyncadd (%p1622_p13), %s1376_s30, 4294967168  ;;  %s22_s23 = sadd.s32 1, %s1875_s23   ;;  %s2215_s18 = smov %s1859_s19 }
 0x9f1   : > { %p19_p0 = scmp.ge.s32.totalorder %s22_s23, 4   ;;  %s2216_s19 = smov %s1863_s20 }
 0x9f2   : > { %s2217_s20 = smov %s2030_s12  ;;  %s2218_s21 = smov %s1871_s22 }
 0x9f3   : > { %s2219_s22 = smov %s2221_s25  ;;  %21 = sbr.rel (!%p19_p0) target bundleno = 9 (0x9), region = 97 }
 0x9f8   :  { %1381 = vsyncpa [#allocation4], 1 }
 0x9f9   :  { %1383 = vsyncpa [#allocation4 + $0x1], 1 }
 0x9fa   :  { %1384 = vsyncpa [#allocation7], 1 }
 0x9fb   :  { %1385 = vsyncpa [#allocation5], 1 }
 0x9fc   :  { %1387 = vsyncpa [#allocation5 + $0x1], 1 }

</bundles_post_ra>
